<compile_context>
chip_gen: v7x
topology: tpu7x:2x2x1
jax: 0.10.0
libtpu: 0.0.40
codegen_flags: <defaults>
</compile_context>

<pallas_src>
import functools

import numpy as np
import jax
import jax.numpy as jnp
from jax import lax
from jax.experimental import pallas as pl
from jax.experimental.pallas import tpu as pltpu


def _dividemix_kernel(ox_ref, tx_ref, ou_ref, tu_ref, lx_ref, lu_ref,
                      *, batch, tile_b, nb, nb_per):
    s = pl.program_id(0)   # parallel batch-split axis (v7x second core)
    i = pl.program_id(1)   # arbitrary (accumulation) axis over batch tiles

    # Zero this split's accumulators at the first tile of the split.
    @pl.when(i == 0)
    def _init():
        lx_ref[0, 0] = jnp.float32(0.0)
        lu_ref[0, 0] = jnp.float32(0.0)

    # f32 upcast right after load (v5e has no bf16 VPU/EUP path).
    ox = ox_ref[...].astype(jnp.float32)
    tx = tx_ref[...].astype(jnp.float32)
    ou = ou_ref[...].astype(jnp.float32)
    tu = tu_ref[...].astype(jnp.float32)

    # Row-validity mask: handles (a) the partial last tile and (b) duplicate
    # grid steps whose block index was clamped in the index_map. Masking uses
    # jnp.where so garbage data in out-of-bounds rows cannot poison the sums.
    tile = s * nb_per + i
    row0 = jnp.minimum(tile, nb - 1) * tile_b          # matches index_map clamp
    rows = row0 + lax.broadcasted_iota(jnp.int32, (tile_b, 1), 0)
    bound = jnp.where(tile < nb, jnp.int32(batch), jnp.int32(0))
    valid = rows < bound                               # (tile_b, 1) bool

    # ---- Lx partial: sum over valid rows of sum_c log_softmax(ox) * tx
    #      (single 2-D reduction; sign + 1/B applied in the wrapper)
    mx = jnp.max(ox, axis=1, keepdims=True)
    sx = ox - mx
    lse = jnp.log(jnp.sum(jnp.exp(sx), axis=1, keepdims=True))
    lx_elem = (sx - lse) * tx
    lx_ref[0, 0] += jnp.sum(jnp.where(valid, lx_elem, 0.0))

    # ---- Lu partial: sum over valid rows of (softmax(ou) - tu)^2
    #      (divide replaced by pl.reciprocal; probs_u not materialized;
    #       1/(B*C) applied in the wrapper)
    mu = jnp.max(ou, axis=1, keepdims=True)
    eu = jnp.exp(ou - mu)
    inv = pl.reciprocal(jnp.sum(eu, axis=1, keepdims=True), approx=False)
    du = eu * inv - tu
    lu_ref[0, 0] += jnp.sum(jnp.where(valid, du * du, 0.0))


def dividemix_forward(outputs_x, targets_x, outputs_u, targets_u,
                      epoch, warm_up, lambda_u, rampup_length=16):
    """Returns (Lx, Lu, lambda_u * linear_rampup(epoch, warm_up))."""
    B, C = outputs_x.shape

    # Batch tile: as large as comfortably fits (per-grid-step overhead ~0.35us),
    # full B if small (full-dim blocks are exempt from the (8,128) rule).
    TB = B if B <= 512 else 512
    nb = -(-B // TB)                       # number of batch tiles
    nsplit = 2 if nb >= 2 else 1           # parallel axis for v7x's 2nd core
    nb_per = -(-nb // nsplit)              # tiles per split (clamped in-kernel)

    kernel = functools.partial(_dividemix_kernel,
                               batch=B, tile_b=TB, nb=nb, nb_per=nb_per)

    def in_map(s, i):
        # Clamp so every DMA origin stays in bounds; duplicate steps are
        # masked to zero contribution inside the kernel.
        return (jnp.minimum(s * nb_per + i, nb - 1), 0)

    in_spec = pl.BlockSpec((TB, C), in_map)
    out_spec = pl.BlockSpec((1, 1), lambda s, i: (s, 0),
                            memory_space=pltpu.MemorySpace.SMEM)

    # Explicit VMEM budget: double-buffered 4 inputs (+ headroom for temps),
    # floored at 8 MiB, capped well under v7x's 64 MiB physical VMEM.
    vmem_limit = min(48 << 20, max(8 << 20, 64 * TB * C))

    lx_parts, lu_parts = pl.pallas_call(
        kernel,
        out_shape=(jax.ShapeDtypeStruct((nsplit, 1), jnp.float32),
                   jax.ShapeDtypeStruct((nsplit, 1), jnp.float32)),
        grid=(nsplit, nb_per),
        in_specs=[in_spec, in_spec, in_spec, in_spec],
        out_specs=(out_spec, out_spec),
        compiler_params=pltpu.CompilerParams(
            dimension_semantics=("parallel", "arbitrary"),
            vmem_limit_bytes=vmem_limit),
    )(outputs_x, targets_x, outputs_u, targets_u)

    # Hoisted normalization / sign (single tiny XLA op on (nsplit,1) arrays).
    lx = -jnp.sum(lx_parts) / jnp.float32(B)
    lu = jnp.sum(lu_parts) / jnp.float32(B * C)

    # linear_rampup: host-side scalar, identical to the PyTorch module.
    current = np.clip((epoch - warm_up) / rampup_length, 0.0, 1.0)
    lamb = lambda_u * float(current)

    return lx, lu, lamb


def _reference(outputs_x, targets_x, outputs_u, targets_u):
    log_probs = jax.nn.log_softmax(outputs_x.astype(jnp.float32), axis=1)
    lx = -jnp.mean(jnp.sum(log_probs * targets_x, axis=1))
    probs_u = jax.nn.softmax(outputs_u.astype(jnp.float32), axis=1)
    lu = jnp.mean((probs_u - targets_u) ** 2)
    return lx, lu


def _run_case(key, B, C, epoch=10, warm_up=5, lambda_u=25.0):
    k1, k2, k3, k4 = jax.random.split(key, 4)
    outputs_x = jax.random.normal(k1, (B, C), dtype=jnp.float32)
    outputs_u = jax.random.normal(k2, (B, C), dtype=jnp.float32)
    # soft targets (rows sum to 1), like the mixed pseudo-labels in DivideMix
    targets_x = jax.nn.softmax(jax.random.normal(k3, (B, C), dtype=jnp.float32), axis=1)
    targets_u = jax.nn.softmax(jax.random.normal(k4, (B, C), dtype=jnp.float32), axis=1)

    lx, lu, lamb = dividemix_forward(outputs_x, targets_x, outputs_u, targets_u,
                                     epoch, warm_up, lambda_u)
    lx = jax.block_until_ready(lx)
    lu = jax.block_until_ready(lu)

    lx_ref, lu_ref = _reference(outputs_x, targets_x, outputs_u, targets_u)
    lamb_ref = lambda_u * float(np.clip((epoch - warm_up) / 16, 0.0, 1.0))

    assert np.allclose(np.asarray(lx), np.asarray(lx_ref), rtol=1e-5, atol=1e-6), \
        (B, C, float(lx), float(lx_ref))
    assert np.allclose(np.asarray(lu), np.asarray(lu_ref), rtol=1e-5, atol=1e-6), \
        (B, C, float(lu), float(lu_ref))
    assert abs(lamb - lamb_ref) < 1e-12


if __name__ == "__main__":
    key = jax.random.PRNGKey(0)
    k_a, k_b = jax.random.split(key)

    # Small shape: single tile, single split.
    _run_case(k_a, B=8, C=32)
    # Ragged multi-tile shape: exercises the parallel split (grid=(2,2)),
    # the clamped duplicate step, and the partial-last-tile masking.
    _run_case(k_b, B=1300, C=48)

    print("KERNEL_OK")
</pallas_src>

<mosaic_0001>
module attributes {stable_mosaic.version = 11 : i64} {
  func.func @_dividemix_kernel(%arg0: i32, %arg1: i32, %arg2: memref<8x32xf32, #tpu.memory_space<vmem>>, %arg3: memref<8x32xf32, #tpu.memory_space<vmem>>, %arg4: memref<8x32xf32, #tpu.memory_space<vmem>>, %arg5: memref<8x32xf32, #tpu.memory_space<vmem>>, %arg6: memref<1x1xf32, #tpu.memory_space<smem>>, %arg7: memref<1x1xf32, #tpu.memory_space<smem>>) attributes {dimension_semantics = [#tpu.dimension_semantics<parallel>, #tpu.dimension_semantics<arbitrary>], iteration_bounds = array<i64: 1, 1>, scalar_prefetch = 0 : i64, scratch_operands = 0 : i64, tpu.core_type = #tpu.core_type<tc>, window_params = [{transform_indices = @transform_0, window_bounds = array<i64: 8, 32>}, {transform_indices = @transform_1, window_bounds = array<i64: 8, 32>}, {transform_indices = @transform_2, window_bounds = array<i64: 8, 32>}, {transform_indices = @transform_3, window_bounds = array<i64: 8, 32>}, {transform_indices = @transform_4, window_bounds = array<i64: 1, 1>}, {transform_indices = @transform_5, window_bounds = array<i64: 1, 1>}]} {
    %c0_i32 = arith.constant 0 : i32
    %0 = arith.cmpi eq, %arg1, %c0_i32 : i32
    %1 = arith.extui %0 : i1 to i32
    %c0_i32_0 = arith.constant 0 : i32
    %2 = arith.cmpi ne, %1, %c0_i32_0 : i32
    scf.if %2 {
      %cst_27 = arith.constant 0.000000e+00 : f32
      %c0_28 = arith.constant 0 : index
      %c0_29 = arith.constant 0 : index
      %63 = memref.load %arg6[%c0_28, %c0_29] : memref<1x1xf32, #tpu.memory_space<smem>>
      memref.store %cst_27, %arg6[%c0_28, %c0_29] : memref<1x1xf32, #tpu.memory_space<smem>>
      %cst_30 = arith.constant 0.000000e+00 : f32
      %c0_31 = arith.constant 0 : index
      %c0_32 = arith.constant 0 : index
      %64 = memref.load %arg7[%c0_31, %c0_32] : memref<1x1xf32, #tpu.memory_space<smem>>
      memref.store %cst_30, %arg7[%c0_31, %c0_32] : memref<1x1xf32, #tpu.memory_space<smem>>
    } else {
    }
    %c0 = arith.constant 0 : index
    %c0_1 = arith.constant 0 : index
    %3 = vector.load %arg2[%c0, %c0_1] : memref<8x32xf32, #tpu.memory_space<vmem>>, vector<8x32xf32>
    %c0_2 = arith.constant 0 : index
    %c0_3 = arith.constant 0 : index
    %4 = vector.load %arg3[%c0_2, %c0_3] : memref<8x32xf32, #tpu.memory_space<vmem>>, vector<8x32xf32>
    %c0_4 = arith.constant 0 : index
    %c0_5 = arith.constant 0 : index
    %5 = vector.load %arg4[%c0_4, %c0_5] : memref<8x32xf32, #tpu.memory_space<vmem>>, vector<8x32xf32>
    %c0_6 = arith.constant 0 : index
    %c0_7 = arith.constant 0 : index
    %6 = vector.load %arg5[%c0_6, %c0_7] : memref<8x32xf32, #tpu.memory_space<vmem>>, vector<8x32xf32>
    %c1_i32 = arith.constant 1 : i32
    %7 = arith.muli %arg0, %c1_i32 : i32
    %8 = arith.addi %7, %arg1 : i32
    %c0_i32_8 = arith.constant 0 : i32
    %9 = arith.minsi %8, %c0_i32_8 : i32
    %c8_i32 = arith.constant 8 : i32
    %10 = arith.muli %9, %c8_i32 : i32
    %11 = tpu.iota {dimensions = array<i32: 0>} : vector<8x1xi32>
    %12 = vector.broadcast %10 : i32 to vector<8x1xi32>
    %13 = arith.addi %12, %11 : vector<8x1xi32>
    %c1_i32_9 = arith.constant 1 : i32
    %14 = arith.cmpi slt, %8, %c1_i32_9 : i32
    %c8_i32_10 = arith.constant 8 : i32
    %c0_i32_11 = arith.constant 0 : i32
    %15 = arith.select %14, %c8_i32_10, %c0_i32_11 : i32
    %16 = vector.broadcast %15 : i32 to vector<8x1xi32>
    %17 = arith.cmpi slt, %13, %16 : vector<8x1xi32>
    %cst = arith.constant dense<0xFF800000> : vector<8xf32>
    %18 = vector.multi_reduction <maximumf>, %3, %cst [1] : vector<8x32xf32> to vector<8xf32>
    %19 = vector.shape_cast %18 : vector<8xf32> to vector<8x1xf32>
    %20 = vector.broadcast %19 : vector<8x1xf32> to vector<8x32xf32>
    %21 = arith.subf %3, %20 : vector<8x32xf32>
    %22 = math.exp %21 : vector<8x32xf32>
    %cst_12 = arith.constant dense<0.000000e+00> : vector<8xf32>
    %23 = vector.multi_reduction <add>, %22, %cst_12 [1] : vector<8x32xf32> to vector<8xf32>
    %24 = vector.shape_cast %23 : vector<8xf32> to vector<8x1xf32>
    %25 = math.log %24 : vector<8x1xf32>
    %26 = vector.broadcast %25 : vector<8x1xf32> to vector<8x32xf32>
    %27 = arith.subf %21, %26 : vector<8x32xf32>
    %28 = arith.mulf %27, %4 : vector<8x32xf32>
    %c0_13 = arith.constant 0 : index
    %c0_14 = arith.constant 0 : index
    %29 = memref.load %arg6[%c0_13, %c0_14] : memref<1x1xf32, #tpu.memory_space<smem>>
    %cst_15 = arith.constant 0.000000e+00 : f32
    %30 = vector.shape_cast %17 : vector<8x1xi1> to vector<8x1xi1>
    %31 = vector.broadcast %30 : vector<8x1xi1> to vector<8x32xi1>
    %32 = vector.broadcast %cst_15 : f32 to vector<8x32xf32>
    %33 = arith.select %31, %28, %32 : vector<8x32xi1>, vector<8x32xf32>
    %34 = vector.shape_cast %33 : vector<8x32xf32> to vector<1x8x32xf32>
    %cst_16 = arith.constant dense<0.000000e+00> : vector<1xf32>
    %35 = vector.multi_reduction <add>, %34, %cst_16 [1, 2] : vector<1x8x32xf32> to vector<1xf32>
    %36 = vector.shape_cast %35 : vector<1xf32> to vector<1x1x1xf32>
    %37 = vector.extract %36[0, 0, 0] : f32 from vector<1x1x1xf32>
    %38 = arith.addf %29, %37 : f32
    %c0_17 = arith.constant 0 : index
    %c0_18 = arith.constant 0 : index
    %39 = memref.load %arg6[%c0_17, %c0_18] : memref<1x1xf32, #tpu.memory_space<smem>>
    memref.store %38, %arg6[%c0_17, %c0_18] : memref<1x1xf32, #tpu.memory_space<smem>>
    %cst_19 = arith.constant dense<0xFF800000> : vector<8xf32>
    %40 = vector.multi_reduction <maximumf>, %5, %cst_19 [1] : vector<8x32xf32> to vector<8xf32>
    %41 = vector.shape_cast %40 : vector<8xf32> to vector<8x1xf32>
    %42 = vector.broadcast %41 : vector<8x1xf32> to vector<8x32xf32>
    %43 = arith.subf %5, %42 : vector<8x32xf32>
    %44 = math.exp %43 : vector<8x32xf32>
    %cst_20 = arith.constant dense<0.000000e+00> : vector<8xf32>
    %45 = vector.multi_reduction <add>, %44, %cst_20 [1] : vector<8x32xf32> to vector<8xf32>
    %46 = vector.shape_cast %45 : vector<8xf32> to vector<8x1xf32>
    %47 = tpu.reciprocal %46 : vector<8x1xf32> -> vector<8x1xf32>
    %48 = vector.broadcast %47 : vector<8x1xf32> to vector<8x32xf32>
    %49 = arith.mulf %44, %48 : vector<8x32xf32>
    %50 = arith.subf %49, %6 : vector<8x32xf32>
    %c0_21 = arith.constant 0 : index
    %c0_22 = arith.constant 0 : index
    %51 = memref.load %arg7[%c0_21, %c0_22] : memref<1x1xf32, #tpu.memory_space<smem>>
    %52 = arith.mulf %50, %50 : vector<8x32xf32>
    %cst_23 = arith.constant 0.000000e+00 : f32
    %53 = vector.shape_cast %17 : vector<8x1xi1> to vector<8x1xi1>
    %54 = vector.broadcast %53 : vector<8x1xi1> to vector<8x32xi1>
    %55 = vector.broadcast %cst_23 : f32 to vector<8x32xf32>
    %56 = arith.select %54, %52, %55 : vector<8x32xi1>, vector<8x32xf32>
    %57 = vector.shape_cast %56 : vector<8x32xf32> to vector<1x8x32xf32>
    %cst_24 = arith.constant dense<0.000000e+00> : vector<1xf32>
    %58 = vector.multi_reduction <add>, %57, %cst_24 [1, 2] : vector<1x8x32xf32> to vector<1xf32>
    %59 = vector.shape_cast %58 : vector<1xf32> to vector<1x1x1xf32>
    %60 = vector.extract %59[0, 0, 0] : f32 from vector<1x1x1xf32>
    %61 = arith.addf %51, %60 : f32
    %c0_25 = arith.constant 0 : index
    %c0_26 = arith.constant 0 : index
    %62 = memref.load %arg7[%c0_25, %c0_26] : memref<1x1xf32, #tpu.memory_space<smem>>
    memref.store %61, %arg7[%c0_25, %c0_26] : memref<1x1xf32, #tpu.memory_space<smem>>
    return
  }
  func.func @transform_0(%arg0: i32, %arg1: i32) -> (i32, i32) {
    %c1_i32 = arith.constant 1 : i32
    %0 = arith.muli %arg0, %c1_i32 : i32
    %1 = arith.addi %0, %arg1 : i32
    %c0_i32 = arith.constant 0 : i32
    %2 = arith.minsi %1, %c0_i32 : i32
    %c0_i32_0 = arith.constant 0 : i32
    %c0_i32_1 = arith.constant 0 : i32
    return %2, %c0_i32_0 : i32, i32
  }
  func.func @transform_1(%arg0: i32, %arg1: i32) -> (i32, i32) {
    %c1_i32 = arith.constant 1 : i32
    %0 = arith.muli %arg0, %c1_i32 : i32
    %1 = arith.addi %0, %arg1 : i32
    %c0_i32 = arith.constant 0 : i32
    %2 = arith.minsi %1, %c0_i32 : i32
    %c0_i32_0 = arith.constant 0 : i32
    %c0_i32_1 = arith.constant 0 : i32
    return %2, %c0_i32_0 : i32, i32
  }
  func.func @transform_2(%arg0: i32, %arg1: i32) -> (i32, i32) {
    %c1_i32 = arith.constant 1 : i32
    %0 = arith.muli %arg0, %c1_i32 : i32
    %1 = arith.addi %0, %arg1 : i32
    %c0_i32 = arith.constant 0 : i32
    %2 = arith.minsi %1, %c0_i32 : i32
    %c0_i32_0 = arith.constant 0 : i32
    %c0_i32_1 = arith.constant 0 : i32
    return %2, %c0_i32_0 : i32, i32
  }
  func.func @transform_3(%arg0: i32, %arg1: i32) -> (i32, i32) {
    %c1_i32 = arith.constant 1 : i32
    %0 = arith.muli %arg0, %c1_i32 : i32
    %1 = arith.addi %0, %arg1 : i32
    %c0_i32 = arith.constant 0 : i32
    %2 = arith.minsi %1, %c0_i32 : i32
    %c0_i32_0 = arith.constant 0 : i32
    %c0_i32_1 = arith.constant 0 : i32
    return %2, %c0_i32_0 : i32, i32
  }
  func.func @transform_4(%arg0: i32, %arg1: i32) -> (i32, i32) {
    %c0_i32 = arith.constant 0 : i32
    %c0_i32_0 = arith.constant 0 : i32
    return %arg0, %c0_i32 : i32, i32
  }
  func.func @transform_5(%arg0: i32, %arg1: i32) -> (i32, i32) {
    %c0_i32 = arith.constant 0 : i32
    %c0_i32_0 = arith.constant 0 : i32
    return %arg0, %c0_i32 : i32, i32
  }
}

</mosaic_0001>

<bundles_post_ra>
// kernel: tpu_custom_call.1
= control target key start
LH: loop header
LB: loop body
LE: loop exit
PB: predicated region body
PF: predicated region fallthrough
CT: control target
= control target key end

     0   :  { %11 = vsyncpa [#allocation3], 0  ;;  %s445_s0 = inlined_call_operand.hbm [shape: f32[8,32], index: 0, kind: input, shape index: {}]   ;;  %s446_s1 = inlined_call_operand.hbm [shape: f32[8,32], index: 1, kind: input, shape index: {}]   ;;  %s447_s2 = inlined_call_operand.hbm [shape: f32[8,32], index: 2, kind: input, shape index: {}]   ;;  %s448_s3 = inlined_call_operand.vmem [shape: f32[8,32], index: 3, kind: input, shape index: {}]   ;;  %s449_s4 = inlined_call_operand.hbm [shape: f32[1,1], index: 4, kind: output, shape index: {0}]   ;;  %s450_s5 = inlined_call_operand.hbm [shape: f32[1,1], index: 5, kind: output, shape index: {1}]  }
   0x1   :  { %12 = vsyncpa [#allocation6], 0 }
   0x2   :  { %13 = vsyncpa [#allocation4], 0 }
   0x3   :  { %14 = vsyncpa [#allocation10], 0  ;;  %s341_s18 = smov [#allocation5]   ;;  %s342_s20 = smov [#allocation2]  }
   0x4   :  { %s41_s19 = sshll.u32 %s341_s18, 4  ;;  %s26_s21 = sshll.u32 %s342_s20, 4  ;;  %s42_s19 = int_to_ptr.vmem [resolvable:$true] %s41_s19  ;;  %s27_s21 = int_to_ptr.vmem [resolvable:$true] %s26_s21 }
   0x5   :  { %s247_s24 = scalar_lea.hbm %s446_s1, 128 }
   0x6   :  { %p248_p0 = scmp.ne.s32.totalorder %s446_s1, %s247_s24  ;;  %p251_p1 = scmp.lt.u32.totalorder %s247_s24, %s446_s1 }
   0x8   :  { %p253_p2 = pnand %p251_p1, %p248_p0 }
   0xa   :  { %256 = shalt.err (!%p253_p2)
}
   0xb   :  { %s257_s29 = scalar_lea.vmem %s42_s19, 128  ;;  %p262_p4 = scmp.lt.s32.totalorder %s42_s19, %s42_s19 }
   0xc   :  { %p258_p3 = scmp.ne.s32.totalorder %s42_s19, %s257_s29  ;;  %p263_p5 = scmp.lt.s32.totalorder %s257_s29, %s257_s29 }
   0xe   :  { %p264_p6 = por %p263_p5, %p262_p4 }
  0x10   :  { %p265_p7 = pnand %p264_p6, %p258_p3 }
  0x12   :  { %268 = shalt.err (!%p265_p7)
}
  0x13   :  { %44 = dma.hbm_to_vmem [thread:$0]  %s446_s1, 128, %s42_s19, [#allocation6]  }
  0x14   :  { %s269_s9 = scalar_lea.hbm %s445_s0, 128 }
  0x15   :  { %p270_p8 = scmp.ne.s32.totalorder %s445_s0, %s269_s9  ;;  %p273_p9 = scmp.lt.u32.totalorder %s269_s9, %s445_s0 }
  0x17   :  { %p275_p10 = pnand %p273_p9, %p270_p8 }
  0x19   :  { %278 = shalt.err (!%p275_p10)
}
  0x1a   :  { %s279_s14 = scalar_lea.vmem %s27_s21, 128  ;;  %p284_p12 = scmp.lt.s32.totalorder %s27_s21, %s27_s21 }
  0x1b   :  { %p280_p11 = scmp.ne.s32.totalorder %s27_s21, %s279_s14  ;;  %p285_p13 = scmp.lt.s32.totalorder %s279_s14, %s279_s14 }
  0x1d   :  { %p286_p0 = por %p285_p13, %p284_p12 }
  0x1f   :  { %p287_p1 = pnand %p286_p0, %p280_p11 }
  0x21   :  { %290 = shalt.err (!%p287_p1)
}
  0x22   :  { %29 = dma.hbm_to_vmem [thread:$0]  %s445_s0, 128, %s27_s21, [#allocation3]  }
  0x23   :  { %s343_s16 = smov [#allocation7]   ;;  %s291_s20 = scalar_lea.hbm %s447_s2, 128 }
  0x24   :  { %s56_s17 = sshll.u32 %s343_s16, 4  ;;  %p292_p2 = scmp.ne.s32.totalorder %s447_s2, %s291_s20  ;;  %s57_s17 = int_to_ptr.vmem [resolvable:$true] %s56_s17 }
  0x25   :  { %p295_p3 = scmp.lt.u32.totalorder %s291_s20, %s447_s2 }
  0x27   :  { %p297_p4 = pnand %p295_p3, %p292_p2 }
  0x29   :  { %300 = shalt.err (!%p297_p4)
}
  0x2a   :  { %s301_s26 = scalar_lea.vmem %s57_s17, 128  ;;  %p306_p6 = scmp.lt.s32.totalorder %s57_s17, %s57_s17 }
  0x2b   :  { %p302_p5 = scmp.ne.s32.totalorder %s57_s17, %s301_s26  ;;  %p307_p7 = scmp.lt.s32.totalorder %s301_s26, %s301_s26 }
  0x2d   :  { %p308_p8 = por %p307_p7, %p306_p6 }
  0x2f   :  { %p309_p9 = pnand %p308_p8, %p302_p5 }
  0x31   :  { %312 = shalt.err (!%p309_p9)
}
  0x32   :  { %59 = dma.hbm_to_vmem [thread:$0]  %s447_s2, 128, %s57_s17, [#allocation6]  }
  0x33   :  { %333 = dma.done.wait [#allocation3], 128  }
  0x34   :  { %334 = vsyncadd [#allocation3], 4294967168 }
  0x35   :  { %335 = dma.done.wait [#allocation6], 256  }
  0x36   :  { %336 = vsyncadd [#allocation6], 4294967040  ;;  %vm131_vm0 = vcmask 261120   ;;  %v115_v0 = vld [vmem:[#allocation2] sm:$0xff]  ;;  %v117_v1 = vld [vmem:[#allocation7] sm:$0xff]  ;;  %s313_s6 = scalar_lea.hbm %s449_s4, 16 }
  0x37   :  { %v132_v2 = vsel %vm131_vm0, %v115_v0, -inf  ;;  %v162_v3 = vsel %vm131_vm0, %v117_v1, -inf  ;;  %v116_v18 = vld [vmem:[#allocation5] sm:$0xff]  ;;  %v118_v21 = vld [vmem:[%s448_s3] sm:$0xff]  ;;  %p314_p10 = scmp.ne.s32.totalorder %s449_s4, %s313_s6  ;;  %p317_p11 = scmp.lt.u32.totalorder %s313_s6, %s449_s4 }
  0x38   :  { %133 = vmax.xlane.f32.xlu0 %v132_v2 }
  0x39   :  { %p319_p12 = pnand %p317_p11, %p314_p10 }
  0x3c   :  { %163 = vmax.xlane.f32.xlu0 %v162_v3 }
  0xc5   :  { %v134_v4 = vpop.xlane.xlu0 %133 }
  0xc6   :  { %v135_v5 = vsub.f32 %v115_v0, %v134_v4 }
  0xc8   :  { %v136_v6 = vmul.f32 1.442695, %v135_v5 }
  0xc9   :  { %v164_v7 = vpop.xlane.xlu0 %163 }
  0xca   :  { %239 = vpow2.f32 %v136_v6  ;;  %v165_v8 = vsub.f32 %v117_v1, %v164_v7 }
  0xcc   :  { %v166_v9 = vmul.f32 1.442695, %v165_v8 }
  0xce   :  { %241 = vpow2.f32 %v166_v9 }
  0xd4   :  { %v240_v10 = vpop.eup %239 }
  0xd5   :  { %v138_v11 = vsel %vm131_vm0, %v240_v10, 0.0 }
  0xd6   :  { %139 = vadd.xlane.f32.xlu1 %v138_v11 }
  0xd8   :  { %v242_v12 = vpop.eup %241 }
  0xd9   :  { %v168_v13 = vsel %vm131_vm0, %v242_v12, 0.0 }
  0xda   :  { %169 = vadd.xlane.f32.xlu1 %v168_v13 }
 0x163   :  { %v140_v14 = vpop.xlane.xlu1 %139 }
 0x164   :  { %243 = vlog2.f32 %v140_v14 }
 0x167   :  { %v170_v15 = vpop.xlane.xlu1 %169 }
 0x168   :  { %245 = vrcp.f32 %v170_v15 }
 0x16e   :  { %v244_v16 = vpop.eup %243 }
 0x16f   :  { %v142_v17 = vmul.f32 0.6931472, %v244_v16 }
 0x171   :  { %v143_v19 = vsub.f32 %v135_v5, %v142_v17 }
 0x172   :  { %v246_v20 = vpop.eup %245 }
 0x173   :  { %v144_v22 = vmul.f32 %v143_v19, %v116_v18  ;;  %v172_v23 = vmul.f32 %v246_v20, %v242_v12 }
 0x175   :  { %v149_v24 = vsel %vm131_vm0, %v144_v22, 0.0  ;;  %v173_v25 = vsub.f32 %v172_v23, %v118_v21 }
 0x176   :  { %150 = vadd.xlane.f32.xlu0 %v149_v24 }
 0x177   :  { %v175_v26 = vmul.f32 %v173_v25, %v173_v25 }
 0x179   :  { %v177_v27 = vsel %vm131_vm0, %v175_v26, 0.0 }
 0x17a   :  { %178 = vadd.xlane.f32.xlu1 %v177_v27 }
 0x203   :  { %v151_v28 = vpop.xlane.xlu0 %150 }
 0x204   :  { %v152_v29 = vrot.slane %v151_v28, 4 }
 0x206   :  { %v153_v30 = vadd.f32 %v152_v29, %v151_v28 }
 0x207   :  { %v179_v31 = vpop.xlane.xlu1 %178 }
 0x208   :  { %v154_v32 = vrot.slane %v153_v30, 2  ;;  %v180_v33 = vrot.slane %v179_v31, 4 }
 0x20a   :  { %v181_v34 = vadd.f32 %v180_v33, %v179_v31  ;;  %v155_v35 = vadd.f32 %v154_v32, %v153_v30 }
 0x20c   :  { %v182_v36 = vrot.slane %v181_v34, 2  ;;  %v156_v37 = vrot.slane %v155_v35, 1 }
 0x20e   :  { %v183_v38 = vadd.f32 %v182_v36, %v181_v34  ;;  %v157_v39 = vadd.f32 %v156_v37, %v155_v35 }
 0x210   :  { %229 = vpush %v157_v39  ;;  %v184_v40 = vrot.slane %v183_v38, 1 }
 0x212   :  { %v185_v41 = vadd.f32 %v184_v40, %v183_v38 }
 0x214   :  { %231 = vpush %v185_v41 }
 0x241   :  { %s230_s3 = spop %229 }
 0x242   :  { %161 = sst [smem:[#allocation8]] %s230_s3 }
 0x245   :  { %s232_s28 = spop %231 }
 0x246   :  { %322 = shalt.err (!%p319_p12)
}
 0x247   :  { %s344_s11 = smov [#allocation8]   ;;  %189 = sst [smem:[#allocation9]] %s232_s28 }
 0x248   :  { %197 = dma.smem_to_hbm %s344_s11, 16, %s449_s4, [#allocation4]  }
 0x249   :  { %s323_s15 = scalar_lea.hbm %s450_s5, 16 }
 0x24a   :  { %p324_p13 = scmp.ne.s32.totalorder %s450_s5, %s323_s15  ;;  %p327_p0 = scmp.lt.u32.totalorder %s323_s15, %s450_s5 }
 0x24c   :  { %p329_p1 = pnand %p327_p0, %p324_p13 }
 0x24e   :  { %332 = shalt.err (!%p329_p1)
}
 0x24f   :  { %s345_s20 = smov [#allocation9]  }
 0x250   :  { %205 = dma.smem_to_hbm %s345_s20, 16, %s450_s5, [#allocation10]  }
 0x251   :  { %337 = dma.done.wait [#allocation4], 16  }
 0x252   :  { %338 = vsyncadd [#allocation4], 4294967280 }
 0x253   :  { %339 = dma.done.wait [#allocation10], 16  }
 0x254   :  { %340 = vsyncadd [#allocation10], 4294967280 }
 0x255   :  { %212 = sfence }
 0x256   :  { %213 = vsyncpa [#allocation3], 1 }
 0x257   :  { %214 = vsyncpa [#allocation6], 1 }
 0x258   :  { %215 = vsyncpa [#allocation4], 1 }
 0x259   :  { %216 = vsyncpa [#allocation10], 1 }

</bundles_post_ra>
